<compile_context>
chip_gen: v7x
topology: tpu7x:2x2x1
jax: 0.10.0
libtpu: 0.0.40
codegen_flags: <defaults>
</compile_context>

<pallas_src>
import jax
import jax.numpy as jnp
from jax.experimental import pallas as pl
from jax.experimental.pallas import tpu as pltpu


def rcnn_kernel(ids_ref, label_ref,                       # SMEM: (S,) i32, (1,) i32
                emb_ref,                                  # (V, E)  f32
                wg_ref, bg_ref,                           # (E, 6H), (1, 6H) fused gates
                w2h_ref, w2e_ref, b2_ref,                 # (2H, W2), (E, W2), (1, W2)
                w4_ref, b4_ref,                           # (W2, L), (1, L)
                out_ref,                                  # (1, 128) f32
                x_scratch):                               # VMEM (S, E) f32
    S, _ = x_scratch.shape
    H = w2h_ref.shape[0] // 2
    L = w4_ref.shape[1]

    # ---- in-kernel embedding gather (token ids live in SMEM) ---------------
    for i in range(S):                                    # S is small and static
        x_scratch[pl.ds(i, 1), :] = emb_ref[pl.ds(ids_ref[i], 1), :]
    x = x_scratch[...]                                    # (S, E)

    # ---- fused bidirectional single-step LSTM (zero state, dead f-gate) ----
    g = jnp.dot(x, wg_ref[...], preferred_element_type=jnp.float32) + bg_ref[...]  # (S, 6H)
    sig = jax.nn.sigmoid(g[:, 0:4 * H])                   # [i_f, i_b, o_f, o_b]
    tg = jnp.tanh(g[:, 4 * H:6 * H])                      # [g_f, g_b]
    i_gate = sig[:, 0:2 * H]
    o_gate = sig[:, 2 * H:4 * H]
    h = o_gate * jnp.tanh(i_gate * tg)                    # (S, 2H) = [h_f | h_b]

    # ---- Y2 = tanh([h_f, h_b, x] @ W2^T + b2) as two dots (no concat) ------
    y2 = jnp.tanh(
        jnp.dot(h, w2h_ref[...], preferred_element_type=jnp.float32)
        + jnp.dot(x, w2e_ref[...], preferred_element_type=jnp.float32)
        + b2_ref[...])                                    # (S, W2)

    # ---- max_pool1d over the sequence, then W4 -----------------------------
    y3 = jnp.max(y2, axis=0, keepdims=True)               # (1, W2)
    y4 = jnp.dot(y3, w4_ref[...], preferred_element_type=jnp.float32) + b4_ref[...]  # (1, L)

    # ---- softmax statistics + the three scalar results (all kept 2D) -------
    m = jnp.max(y4, axis=1, keepdims=True)                # (1, 1)
    e = jnp.exp(y4 - m)                                   # (1, L)
    s = jnp.sum(e, axis=1, keepdims=True)                 # (1, 1)
    log_s = jnp.log(s)                                    # (1, 1)

    lane = jax.lax.broadcasted_iota(jnp.int32, y4.shape, 1)
    label = label_ref[0]
    y4_label = jnp.sum(jnp.where(lane == label, y4, 0.0), axis=1, keepdims=True)

    loss = -(y4_label - m - log_s)                        # NLLLoss(LogSoftmax(y4), label)
    pred = jnp.min(jnp.where(y4 == m, lane, L),           # argmax (first max index)
                   axis=1, keepdims=True)
    prob = 1.0 / s                                        # softmax value at the argmax

    # ---- single lane-dense output: lane0=loss, lane1=pred, lane2=prob ------
    out_lane = jax.lax.broadcasted_iota(jnp.int32, out_ref.shape, 1)
    res = jnp.where(out_lane == 0, loss, 0.0)
    res = jnp.where(out_lane == 1, pred.astype(jnp.float32), res)
    res = jnp.where(out_lane == 2, prob, res)
    out_ref[...] = res


def rcnn_forward(sentence, label, params):
    H = params["hidden"]
    emb = params["emb"]
    E = emb.shape[1]
    S = sentence.shape[0]
    W2o = params["w2"].shape[0]
    L = params["w4"].shape[0]

    # PyTorch LSTM gate order (rows of weight_ih) is [i | f | g | o].
    def gate_cols(w_ih, b_ih, b_hh):
        w_t = w_ih.T                                     # (E, 4H) cols [i | f | g | o]
        b = b_ih + b_hh                                  # h0 == 0 folds b_hh in
        return ((w_t[:, 0:H], w_t[:, 3 * H:4 * H], w_t[:, 2 * H:3 * H]),
                (b[0:H], b[3 * H:4 * H], b[2 * H:3 * H]))

    (wi_f, wo_f, wg_f), (bi_f, bo_f, bg_f) = gate_cols(
        params["w_ih_f"], params["b_ih_f"], params["b_hh_f"])
    (wi_b, wo_b, wg_b), (bi_b, bo_b, bg_b) = gate_cols(
        params["w_ih_b"], params["b_ih_b"], params["b_hh_b"])

    # Fused gate weights, columns [i_f, i_b | o_f, o_b | g_f, g_b] (f-gate dropped).
    w_gates = jnp.concatenate([wi_f, wi_b, wo_f, wo_b, wg_f, wg_b], axis=1)   # (E, 6H)
    b_gates = jnp.concatenate([bi_f, bi_b, bo_f, bo_b, bg_f, bg_b]).reshape(1, 6 * H)

    w2_t = params["w2"].T                                # (2H+E, W2out)
    w2h = w2_t[0:2 * H]                                  # rows matching [h_f | h_b]
    w2e = w2_t[2 * H:]                                   # rows matching x
    b2 = params["b2"].reshape(1, W2o)
    w4_t = params["w4"].T                                # (W2out, L)
    b4 = params["b4"].reshape(1, L)

    ids = sentence.astype(jnp.int32)
    label_arr = jnp.asarray([label], dtype=jnp.int32)

    smem = pl.BlockSpec(memory_space=pltpu.MemorySpace.SMEM)
    vmem = pl.BlockSpec(memory_space=pltpu.MemorySpace.VMEM)

    res = pl.pallas_call(
        rcnn_kernel,
        out_shape=jax.ShapeDtypeStruct((1, 128), jnp.float32),
        in_specs=[smem, smem] + [vmem] * 8,
        out_specs=vmem,
        scratch_shapes=[pltpu.VMEM((S, E), jnp.float32)],
    )(ids, label_arr, emb, w_gates, b_gates, w2h, w2e, b2, w4_t, b4)

    loss_val = res[0, 0]
    prediction = res[0, 1].astype(jnp.int32)
    prediction_prob = res[0, 2]
    return loss_val, prediction, prediction_prob


def init_params(key, vocab=50, emb_dim=32, hidden=32, w2_out=32, labels=8):
    ks = jax.random.split(key, 8)
    k_lstm = 1.0 / jnp.sqrt(hidden)

    def xavier(k, shape):
        bound = jnp.sqrt(6.0 / (shape[0] + shape[1]))
        return jax.random.uniform(k, shape, jnp.float32, -bound, bound)

    return {
        "hidden": hidden,
        "emb": jax.random.normal(ks[0], (vocab, emb_dim), jnp.float32),
        "w_ih_f": jax.random.uniform(ks[1], (4 * hidden, emb_dim), jnp.float32, -k_lstm, k_lstm),
        "b_ih_f": jax.random.uniform(ks[2], (4 * hidden,), jnp.float32, -k_lstm, k_lstm),
        "b_hh_f": jax.random.uniform(ks[3], (4 * hidden,), jnp.float32, -k_lstm, k_lstm),
        "w_ih_b": jax.random.uniform(ks[4], (4 * hidden, emb_dim), jnp.float32, -k_lstm, k_lstm),
        "b_ih_b": jax.random.uniform(ks[5], (4 * hidden,), jnp.float32, -k_lstm, k_lstm),
        "b_hh_b": jax.random.uniform(ks[6], (4 * hidden,), jnp.float32, -k_lstm, k_lstm),
        "w2": xavier(ks[7], (w2_out, 2 * hidden + emb_dim)),
        "b2": jnp.zeros((w2_out,), jnp.float32),
        "w4": xavier(jax.random.fold_in(key, 99), (labels, w2_out)),
        "b4": jnp.zeros((labels,), jnp.float32),
    }
    # TODO(synk): nn.Dropout / LSTM inter-layer dropout are inference no-ops here
    # (dropout_linear is never applied in the original forward; single-layer LSTM).
    # TODO(synk): `loss_function` is a constructor arg in PyTorch; NLLLoss is assumed
    # (the canonical pairing with the LogSoftmax output used for the loss).


if __name__ == "__main__":
    key = jax.random.PRNGKey(0)
    params = init_params(key)
    seq_len = 8
    sentence = jax.random.randint(jax.random.fold_in(key, 1), (seq_len,), 0, 50)
    ground_truth = 3

    loss_val, prediction, prediction_prob = rcnn_forward(sentence, ground_truth, params)
    jax.block_until_ready((loss_val, prediction, prediction_prob))
    print("KERNEL_OK")
</pallas_src>

<mosaic_0001>
module attributes {stable_mosaic.version = 11 : i64} {
  func.func @rcnn_kernel(%arg0: memref<8xi32, #tpu.memory_space<smem>>, %arg1: memref<1xi32, #tpu.memory_space<smem>>, %arg2: memref<50x32xf32, #tpu.memory_space<vmem>>, %arg3: memref<32x192xf32, #tpu.memory_space<vmem>>, %arg4: memref<1x192xf32, #tpu.memory_space<vmem>>, %arg5: memref<64x32xf32, #tpu.memory_space<vmem>>, %arg6: memref<32x32xf32, #tpu.memory_space<vmem>>, %arg7: memref<1x32xf32, #tpu.memory_space<vmem>>, %arg8: memref<32x8xf32, #tpu.memory_space<vmem>>, %arg9: memref<1x8xf32, #tpu.memory_space<vmem>>, %arg10: memref<1x128xf32, #tpu.memory_space<vmem>>, %arg11: memref<8x32xf32, #tpu.memory_space<vmem>>) attributes {dimension_semantics = [], scalar_prefetch = 0 : i64, scratch_operands = 1 : i64, tpu.core_type = #tpu.core_type<tc>} {
    %c0 = arith.constant 0 : index
    %0 = memref.load %arg0[%c0] : memref<8xi32, #tpu.memory_space<smem>>
    %1 = arith.index_cast %0 : i32 to index
    %c0_0 = arith.constant 0 : index
    %2 = vector.load %arg2[%1, %c0_0] : memref<50x32xf32, #tpu.memory_space<vmem>>, vector<1x32xf32>
    %c0_1 = arith.constant 0 : index
    %c0_2 = arith.constant 0 : index
    %3 = vector.load %arg11[%c0_1, %c0_2] : memref<8x32xf32, #tpu.memory_space<vmem>>, vector<1x32xf32>
    tpu.vector_store %arg11[%c0_1, %c0_2], %2 {strides = array<i32>} : memref<8x32xf32, #tpu.memory_space<vmem>>, vector<1x32xf32>,
    %c1 = arith.constant 1 : index
    %4 = memref.load %arg0[%c1] : memref<8xi32, #tpu.memory_space<smem>>
    %5 = arith.index_cast %4 : i32 to index
    %c0_3 = arith.constant 0 : index
    %6 = vector.load %arg2[%5, %c0_3] : memref<50x32xf32, #tpu.memory_space<vmem>>, vector<1x32xf32>
    %c1_4 = arith.constant 1 : index
    %c0_5 = arith.constant 0 : index
    %7 = vector.load %arg11[%c1_4, %c0_5] : memref<8x32xf32, #tpu.memory_space<vmem>>, vector<1x32xf32>
    tpu.vector_store %arg11[%c1_4, %c0_5], %6 {strides = array<i32>} : memref<8x32xf32, #tpu.memory_space<vmem>>, vector<1x32xf32>,
    %c2 = arith.constant 2 : index
    %8 = memref.load %arg0[%c2] : memref<8xi32, #tpu.memory_space<smem>>
    %9 = arith.index_cast %8 : i32 to index
    %c0_6 = arith.constant 0 : index
    %10 = vector.load %arg2[%9, %c0_6] : memref<50x32xf32, #tpu.memory_space<vmem>>, vector<1x32xf32>
    %c2_7 = arith.constant 2 : index
    %c0_8 = arith.constant 0 : index
    %11 = vector.load %arg11[%c2_7, %c0_8] : memref<8x32xf32, #tpu.memory_space<vmem>>, vector<1x32xf32>
    tpu.vector_store %arg11[%c2_7, %c0_8], %10 {strides = array<i32>} : memref<8x32xf32, #tpu.memory_space<vmem>>, vector<1x32xf32>,
    %c3 = arith.constant 3 : index
    %12 = memref.load %arg0[%c3] : memref<8xi32, #tpu.memory_space<smem>>
    %13 = arith.index_cast %12 : i32 to index
    %c0_9 = arith.constant 0 : index
    %14 = vector.load %arg2[%13, %c0_9] : memref<50x32xf32, #tpu.memory_space<vmem>>, vector<1x32xf32>
    %c3_10 = arith.constant 3 : index
    %c0_11 = arith.constant 0 : index
    %15 = vector.load %arg11[%c3_10, %c0_11] : memref<8x32xf32, #tpu.memory_space<vmem>>, vector<1x32xf32>
    tpu.vector_store %arg11[%c3_10, %c0_11], %14 {strides = array<i32>} : memref<8x32xf32, #tpu.memory_space<vmem>>, vector<1x32xf32>,
    %c4 = arith.constant 4 : index
    %16 = memref.load %arg0[%c4] : memref<8xi32, #tpu.memory_space<smem>>
    %17 = arith.index_cast %16 : i32 to index
    %c0_12 = arith.constant 0 : index
    %18 = vector.load %arg2[%17, %c0_12] : memref<50x32xf32, #tpu.memory_space<vmem>>, vector<1x32xf32>
    %c4_13 = arith.constant 4 : index
    %c0_14 = arith.constant 0 : index
    %19 = vector.load %arg11[%c4_13, %c0_14] : memref<8x32xf32, #tpu.memory_space<vmem>>, vector<1x32xf32>
    tpu.vector_store %arg11[%c4_13, %c0_14], %18 {strides = array<i32>} : memref<8x32xf32, #tpu.memory_space<vmem>>, vector<1x32xf32>,
    %c5 = arith.constant 5 : index
    %20 = memref.load %arg0[%c5] : memref<8xi32, #tpu.memory_space<smem>>
    %21 = arith.index_cast %20 : i32 to index
    %c0_15 = arith.constant 0 : index
    %22 = vector.load %arg2[%21, %c0_15] : memref<50x32xf32, #tpu.memory_space<vmem>>, vector<1x32xf32>
    %c5_16 = arith.constant 5 : index
    %c0_17 = arith.constant 0 : index
    %23 = vector.load %arg11[%c5_16, %c0_17] : memref<8x32xf32, #tpu.memory_space<vmem>>, vector<1x32xf32>
    tpu.vector_store %arg11[%c5_16, %c0_17], %22 {strides = array<i32>} : memref<8x32xf32, #tpu.memory_space<vmem>>, vector<1x32xf32>,
    %c6 = arith.constant 6 : index
    %24 = memref.load %arg0[%c6] : memref<8xi32, #tpu.memory_space<smem>>
    %25 = arith.index_cast %24 : i32 to index
    %c0_18 = arith.constant 0 : index
    %26 = vector.load %arg2[%25, %c0_18] : memref<50x32xf32, #tpu.memory_space<vmem>>, vector<1x32xf32>
    %c6_19 = arith.constant 6 : index
    %c0_20 = arith.constant 0 : index
    %27 = vector.load %arg11[%c6_19, %c0_20] : memref<8x32xf32, #tpu.memory_space<vmem>>, vector<1x32xf32>
    tpu.vector_store %arg11[%c6_19, %c0_20], %26 {strides = array<i32>} : memref<8x32xf32, #tpu.memory_space<vmem>>, vector<1x32xf32>,
    %c7 = arith.constant 7 : index
    %28 = memref.load %arg0[%c7] : memref<8xi32, #tpu.memory_space<smem>>
    %29 = arith.index_cast %28 : i32 to index
    %c0_21 = arith.constant 0 : index
    %30 = vector.load %arg2[%29, %c0_21] : memref<50x32xf32, #tpu.memory_space<vmem>>, vector<1x32xf32>
    %c7_22 = arith.constant 7 : index
    %c0_23 = arith.constant 0 : index
    %31 = vector.load %arg11[%c7_22, %c0_23] : memref<8x32xf32, #tpu.memory_space<vmem>>, vector<1x32xf32>
    tpu.vector_store %arg11[%c7_22, %c0_23], %30 {strides = array<i32>} : memref<8x32xf32, #tpu.memory_space<vmem>>, vector<1x32xf32>,
    %c0_24 = arith.constant 0 : index
    %c0_25 = arith.constant 0 : index
    %32 = vector.load %arg11[%c0_24, %c0_25] : memref<8x32xf32, #tpu.memory_space<vmem>>, vector<8x32xf32>
    %c0_26 = arith.constant 0 : index
    %c0_27 = arith.constant 0 : index
    %33 = vector.load %arg3[%c0_26, %c0_27] : memref<32x192xf32, #tpu.memory_space<vmem>>, vector<32x192xf32>
    %cst = arith.constant dense<0.000000e+00> : vector<8x192xf32>
    %34 = tpu.matmul %32, %33, %cst {dimension_numbers = #tpu.dot_dimension_numbers<[1], [0], [0], [1], [0, 0, 1, 1], [], []>} : vector<8x32xf32>, vector<32x192xf32>, vector<8x192xf32> -> vector<8x192xf32>
    %c0_28 = arith.constant 0 : index
    %c0_29 = arith.constant 0 : index
    %35 = vector.load %arg4[%c0_28, %c0_29] : memref<1x192xf32, #tpu.memory_space<vmem>>, vector<1x192xf32>
    %36 = vector.broadcast %35 : vector<1x192xf32> to vector<8x192xf32>
    %37 = arith.addf %34, %36 : vector<8x192xf32>
    %38 = vector.extract_strided_slice %37 {offsets = [0, 0], sizes = [8, 128], strides = [1, 1]} : vector<8x192xf32> to vector<8x128xf32>
    %39 = arith.negf %38 : vector<8x128xf32>
    %40 = math.exp %39 : vector<8x128xf32>
    %cst_30 = arith.constant 1.000000e+00 : f32
    %41 = vector.broadcast %cst_30 : f32 to vector<8x128xf32>
    %42 = arith.addf %41, %40 : vector<8x128xf32>
    %43 = arith.divf %41, %42 : vector<8x128xf32>
    %44 = vector.extract_strided_slice %37 {offsets = [0, 128], sizes = [8, 64], strides = [1, 1]} : vector<8x192xf32> to vector<8x64xf32>
    %45 = math.tanh %44 : vector<8x64xf32>
    %46 = vector.extract_strided_slice %43 {offsets = [0, 0], sizes = [8, 64], strides = [1, 1]} : vector<8x128xf32> to vector<8x64xf32>
    %47 = vector.extract_strided_slice %43 {offsets = [0, 64], sizes = [8, 64], strides = [1, 1]} : vector<8x128xf32> to vector<8x64xf32>
    %48 = arith.mulf %46, %45 : vector<8x64xf32>
    %49 = math.tanh %48 : vector<8x64xf32>
    %50 = arith.mulf %47, %49 : vector<8x64xf32>
    %c0_31 = arith.constant 0 : index
    %c0_32 = arith.constant 0 : index
    %51 = vector.load %arg5[%c0_31, %c0_32] : memref<64x32xf32, #tpu.memory_space<vmem>>, vector<64x32xf32>
    %cst_33 = arith.constant dense<0.000000e+00> : vector<8x32xf32>
    %52 = tpu.matmul %50, %51, %cst_33 {dimension_numbers = #tpu.dot_dimension_numbers<[1], [0], [0], [1], [0, 0, 1, 1], [], []>} : vector<8x64xf32>, vector<64x32xf32>, vector<8x32xf32> -> vector<8x32xf32>
    %c0_34 = arith.constant 0 : index
    %c0_35 = arith.constant 0 : index
    %53 = vector.load %arg6[%c0_34, %c0_35] : memref<32x32xf32, #tpu.memory_space<vmem>>, vector<32x32xf32>
    %cst_36 = arith.constant dense<0.000000e+00> : vector<8x32xf32>
    %54 = tpu.matmul %32, %53, %cst_36 {dimension_numbers = #tpu.dot_dimension_numbers<[1], [0], [0], [1], [0, 0, 1, 1], [], []>} : vector<8x32xf32>, vector<32x32xf32>, vector<8x32xf32> -> vector<8x32xf32>
    %55 = arith.addf %52, %54 : vector<8x32xf32>
    %c0_37 = arith.constant 0 : index
    %c0_38 = arith.constant 0 : index
    %56 = vector.load %arg7[%c0_37, %c0_38] : memref<1x32xf32, #tpu.memory_space<vmem>>, vector<1x32xf32>
    %57 = vector.broadcast %56 : vector<1x32xf32> to vector<8x32xf32>
    %58 = arith.addf %55, %57 : vector<8x32xf32>
    %59 = math.tanh %58 : vector<8x32xf32>
    %cst_39 = arith.constant dense<0xFF800000> : vector<32xf32>
    %60 = vector.multi_reduction <maximumf>, %59, %cst_39 [0] : vector<8x32xf32> to vector<32xf32>
    %61 = vector.shape_cast %60 : vector<32xf32> to vector<1x32xf32>
    %c0_40 = arith.constant 0 : index
    %c0_41 = arith.constant 0 : index
    %62 = vector.load %arg8[%c0_40, %c0_41] : memref<32x8xf32, #tpu.memory_space<vmem>>, vector<32x8xf32>
    %cst_42 = arith.constant dense<0.000000e+00> : vector<1x8xf32>
    %63 = tpu.matmul %61, %62, %cst_42 {dimension_numbers = #tpu.dot_dimension_numbers<[1], [0], [0], [1], [0, 0, 1, 1], [], []>} : vector<1x32xf32>, vector<32x8xf32>, vector<1x8xf32> -> vector<1x8xf32>
    %c0_43 = arith.constant 0 : index
    %c0_44 = arith.constant 0 : index
    %64 = vector.load %arg9[%c0_43, %c0_44] : memref<1x8xf32, #tpu.memory_space<vmem>>, vector<1x8xf32>
    %65 = arith.addf %63, %64 : vector<1x8xf32>
    %cst_45 = arith.constant dense<0xFF800000> : vector<1xf32>
    %66 = vector.multi_reduction <maximumf>, %65, %cst_45 [1] : vector<1x8xf32> to vector<1xf32>
    %67 = vector.shape_cast %66 : vector<1xf32> to vector<1x1xf32>
    %68 = vector.broadcast %67 : vector<1x1xf32> to vector<1x8xf32>
    %69 = arith.subf %65, %68 : vector<1x8xf32>
    %70 = math.exp %69 : vector<1x8xf32>
    %cst_46 = arith.constant dense<0.000000e+00> : vector<1xf32>
    %71 = vector.multi_reduction <add>, %70, %cst_46 [1] : vector<1x8xf32> to vector<1xf32>
    %72 = vector.shape_cast %71 : vector<1xf32> to vector<1x1xf32>
    %73 = math.log %72 : vector<1x1xf32>
    %74 = tpu.iota {dimensions = array<i32: 1>} : vector<1x8xi32>
    %c0_47 = arith.constant 0 : index
    %75 = memref.load %arg1[%c0_47] : memref<1xi32, #tpu.memory_space<smem>>
    %76 = vector.broadcast %75 : i32 to vector<1x8xi32>
    %77 = arith.cmpi eq, %74, %76 : vector<1x8xi32>
    %cst_48 = arith.constant 0.000000e+00 : f32
    %78 = vector.broadcast %cst_48 : f32 to vector<1x8xf32>
    %79 = arith.select %77, %65, %78 : vector<1x8xi1>, vector<1x8xf32>
    %cst_49 = arith.constant dense<0.000000e+00> : vector<1xf32>
    %80 = vector.multi_reduction <add>, %79, %cst_49 [1] : vector<1x8xf32> to vector<1xf32>
    %81 = vector.shape_cast %80 : vector<1xf32> to vector<1x1xf32>
    %82 = arith.subf %81, %67 : vector<1x1xf32>
    %83 = arith.subf %82, %73 : vector<1x1xf32>
    %cst_50 = arith.constant 0.000000e+00 : f32
    %84 = vector.broadcast %cst_50 : f32 to vector<1x1xf32>
    %85 = arith.subf %84, %83 : vector<1x1xf32>
    %86 = vector.broadcast %67 : vector<1x1xf32> to vector<1x8xf32>
    %87 = arith.cmpf oeq, %65, %86 : vector<1x8xf32>
    %c8_i32 = arith.constant 8 : i32
    %88 = vector.broadcast %c8_i32 : i32 to vector<1x8xi32>
    %89 = arith.select %87, %74, %88 : vector<1x8xi1>, vector<1x8xi32>
    %cst_51 = arith.constant dense<2147483647> : vector<1xi32>
    %90 = vector.multi_reduction <minsi>, %89, %cst_51 [1] : vector<1x8xi32> to vector<1xi32>
    %91 = vector.shape_cast %90 : vector<1xi32> to vector<1x1xi32>
    %cst_52 = arith.constant 1.000000e+00 : f32
    %92 = vector.broadcast %cst_52 : f32 to vector<1x1xf32>
    %93 = arith.divf %92, %72 : vector<1x1xf32>
    %94 = tpu.iota {dimensions = array<i32: 1>} : vector<1x128xi32>
    %c0_i32 = arith.constant 0 : i32
    %95 = vector.broadcast %c0_i32 : i32 to vector<1x128xi32>
    %96 = arith.cmpi eq, %94, %95 : vector<1x128xi32>
    %cst_53 = arith.constant 0.000000e+00 : f32
    %97 = vector.shape_cast %85 : vector<1x1xf32> to vector<1x1xf32>
    %98 = vector.broadcast %97 : vector<1x1xf32> to vector<1x128xf32>
    %99 = vector.broadcast %cst_53 : f32 to vector<1x128xf32>
    %100 = arith.select %96, %98, %99 : vector<1x128xi1>, vector<1x128xf32>
    %c1_i32 = arith.constant 1 : i32
    %101 = vector.broadcast %c1_i32 : i32 to vector<1x128xi32>
    %102 = arith.cmpi eq, %94, %101 : vector<1x128xi32>
    %103 = arith.sitofp %91 : vector<1x1xi32> to vector<1x1xf32>
    %104 = vector.shape_cast %103 : vector<1x1xf32> to vector<1x1xf32>
    %105 = vector.broadcast %104 : vector<1x1xf32> to vector<1x128xf32>
    %106 = arith.select %102, %105, %100 : vector<1x128xi1>, vector<1x128xf32>
    %c2_i32 = arith.constant 2 : i32
    %107 = vector.broadcast %c2_i32 : i32 to vector<1x128xi32>
    %108 = arith.cmpi eq, %94, %107 : vector<1x128xi32>
    %109 = vector.shape_cast %93 : vector<1x1xf32> to vector<1x1xf32>
    %110 = vector.broadcast %109 : vector<1x1xf32> to vector<1x128xf32>
    %111 = arith.select %108, %110, %106 : vector<1x128xi1>, vector<1x128xf32>
    %c0_54 = arith.constant 0 : index
    %c0_55 = arith.constant 0 : index
    %112 = vector.load %arg10[%c0_54, %c0_55] : memref<1x128xf32, #tpu.memory_space<vmem>>, vector<1x128xf32>
    tpu.vector_store %arg10[%c0_54, %c0_55], %111 {strides = array<i32>} : memref<1x128xf32, #tpu.memory_space<vmem>>, vector<1x128xf32>,
    return
  }
}

</mosaic_0001>

<bundles_post_ra>
// kernel: tpu_custom_call.1
= control target key start
LH: loop header
LB: loop body
LE: loop exit
PB: predicated region body
PF: predicated region fallthrough
CT: control target
= control target key end

     0   :  { %16 = vsyncpa [#allocation6], 0  ;;  %s893_s0 = inlined_call_operand.vmem [shape: s32[8], index: 0, kind: input, shape index: {}]   ;;  %s894_s1 = inlined_call_operand.<no memory space> [shape: s32[1], index: 1, kind: input, shape index: {}]   ;;  %s895_s2 = inlined_call_operand.vmem [shape: f32[50,32], index: 2, kind: input, shape index: {}]   ;;  %s896_s3 = inlined_call_operand.vmem [shape: f32[32,192], index: 3, kind: input, shape index: {}]   ;;  %s897_s4 = inlined_call_operand.vmem [shape: f32[1,192], index: 4, kind: input, shape index: {}]   ;;  %s898_s5 = inlined_call_operand.vmem [shape: f32[64,32], index: 5, kind: input, shape index: {}]   ;;  %s899_s6 = inlined_call_operand.vmem [shape: f32[32,32], index: 6, kind: input, shape index: {}]   ;;  %s900_s7 = inlined_call_operand.vmem [shape: f32[1,32], index: 7, kind: input, shape index: {}]   ;;  %s901_s8 = inlined_call_operand.vmem [shape: f32[32,8], index: 8, kind: input, shape index: {}]   ;;  %s902_s9 = inlined_call_operand.vmem [shape: f32[1,8], index: 9, kind: input, shape index: {}]   ;;  %s903_s10 = inlined_call_operand.hbm [shape: f32[1,128], index: 10, kind: output, shape index: {}]  }
   0x1   :  { %17 = vsyncpa [#allocation5], 0  ;;  %s24_s15 = sshll.u32 %s893_s0, 4  ;;  %s25_s15 = int_to_ptr.vmem [resolvable:$true] %s24_s15 }
   0x2   :  { %s646_s16 = scalar_lea.vmem %s25_s15, 16  ;;  %p651_p1 = scmp.lt.s32.totalorder %s25_s15, %s25_s15 }
   0x3   :  { %p647_p0 = scmp.ne.s32.totalorder %s25_s15, %s646_s16  ;;  %p652_p2 = scmp.lt.s32.totalorder %s646_s16, %s646_s16 }
   0x5   :  { %p653_p3 = por %p652_p2, %p651_p1 }
   0x7   :  { %p654_p4 = pnand %p653_p3, %p647_p0 }
   0x9   :  { %657 = shalt.err (!%p654_p4)
}
   0xa   :  { %s684_s17 = smov [#allocation4]  }
   0xb   :  { %27 = dma.vmem_to_smem %s25_s15, 16, %s684_s17, [#allocation6]  }
   0xc   :  { %680 = dma.done.wait [#allocation6], 16  }
   0xd   :  { %681 = vsyncadd [#allocation6], 4294967280 }
   0xe   :  { %49 = sfence }
   0xf   :  { %v85_v0 = vld [vmem:[%s896_s3 + $0x8] sm:$0xff]  ;;  %v87_v1 = vld [vmem:[%s896_s3 + $0x18] sm:$0xff]  ;;  %v84_v2 = vld [vmem:[%s896_s3] sm:$0xff]  ;;  %s50_s23 = sld [smem:[#allocation4]]  ;;  %v685_v7 = vmov 0.0   ;;  %s519_s30 = sld [smem:[#allocation4 + $0x1]]  ;;  %v94_v22 = vlaneseq }
  0x10   :  { %v592_v3 = vpack.c.bf16 %v87_v1, %v85_v0  ;;  %v86_v4 = vld [vmem:[%s896_s3 + $0x10] sm:$0xff]  ;;  %v89_v5 = vld [vmem:[%s896_s3 + $0x28] sm:$0xff]  ;;  %v91_v6 = vld [vmem:[%s896_s3 + $0x38] sm:$0xff]  ;;  %172 = vmatprep.mubr.f32.mxu0 %v685_v7  ;;  %s520_s15 = sld [smem:[#allocation4 + $0x2]]  ;;  %s521_s16 = sld [smem:[#allocation4 + $0x3]]  ;;  %vm53_vm0 = vcmask 253952  }
  0x11   :  { %v594_v8 = vpack.c.bf16 %v86_v4, %v84_v2  ;;  %v596_v9 = vpack.c.bf16 %v91_v6, %v89_v5  ;;  %v88_v10 = vld [vmem:[%s896_s3 + $0x20] sm:$0xff]  ;;  %v90_v11 = vld [vmem:[%s896_s3 + $0x30] sm:$0xff]  ;;  %s522_s17 = sld [smem:[#allocation4 + $0x4]]  ;;  %s523_s18 = sld [smem:[#allocation4 + $0x5]]  ;;  %vm104_vm1 = vcmask 261120   ;;  %v95_v23 = vshrl.u32 %v94_v22, 7 }
  0x12   :  { %593 = vmatprep.subr.bf16.mxu0 %v592_v3  ;;  %v598_v12 = vpack.c.bf16 %v90_v11, %v88_v10  ;;  %s524_s19 = sld [smem:[#allocation4 + $0x6]]  ;;  %s525_s20 = sld [smem:[#allocation4 + $0x7]]  ;;  %v92_v25 = vld [vmem:[%s897_s4] sm:$0x3]  ;;  %v194_v40 = vld [vmem:[%s898_s5 + $0x8] sm:$0xff]  ;;  %v195_v41 = vld [vmem:[%s898_s5 + $0x10] sm:$0xff] }
  0x13   :  { %595 = vmatpush1.bf16.msra.mxu0 %v594_v8  ;;  %v96_v24 = vsub.s32 0, %v95_v23  ;;  %v100_v31 = vsub.s32 1, %v95_v23  ;;  %v193_v39 = vld [vmem:[%s898_s5] sm:$0xff]  ;;  %v686_v42 = vmov 0.0|0.0   ;;  %v196_v44 = vld [vmem:[%s898_s5 + $0x18] sm:$0xff]  ;;  %v202_v46 = vld [vmem:[%s899_s6 + $0x8] sm:$0xff] }
  0x14   :  { %597 = vmatprep.subr.bf16.mxu0 %v596_v9  ;;  %v607_v43 = vpack.c.bf16 %v194_v40, %v193_v39  ;;  %600 = vmatprep.subr.bf16.mxu1 %v686_v42  ;;  %v201_v45 = vld [vmem:[%s899_s6] sm:$0xff]  ;;  %v203_v48 = vld [vmem:[%s899_s6 + $0x10] sm:$0xff]  ;;  %vm687_vm2 = vmmov 0   ;;  %v610_v49 = vpack.c.bf16 %v196_v44, %v195_v41  ;;  %v204_v50 = vld [vmem:[%s899_s6 + $0x18] sm:$0xff]  ;;  %vm278_vm3 = vcmask 523264  }
  0x15   :  { %s51_s22 = scalar_lea.vmem %s895_s2, %s50_s23  ;;  %s56_s3 = scalar_lea.vmem %s895_s2, %s519_s30  ;;  %v97_v26 = vrot.slane %v92_v25, %v96_v24  ;;  %v101_v32 = vrot.slane %v92_v25, %v100_v31  ;;  %v601_v47 = vpack.c.bf16 %v202_v46, %v201_v45  ;;  %559 = vmatprep.mubr.msk.f32.mxu1 %vm687_vm2, %v685_v7  ;;  %v197_v51 = vld [vmem:[%s898_s5 + $0x20] sm:$0xff]  ;;  %v198_v52 = vld [vmem:[%s898_s5 + $0x28] sm:$0xff]  ;;  %v604_v53 = vpack.c.bf16 %v204_v50, %v203_v48  ;;  %v199_v55 = vld [vmem:[%s898_s5 + $0x30] sm:$0xff] }
  0x16   :  { %v52_v13 = vld [vmem:[%s51_s22] sm:$0x1]  ;;  %s60_s28 = scalar_lea.vmem %s895_s2, %s520_s15  ;;  %s64_s12 = scalar_lea.vmem %s895_s2, %s521_s16  ;;  %v613_v54 = vpack.c.bf16 %v198_v52, %v197_v51  ;;  %v200_v56 = vld [vmem:[%s898_s5 + $0x38] sm:$0xff]  ;;  %v368_v1 = vld [vmem:[%s901_s8 + $0x8] sm:$0xff]  ;;  %vm445_vm4 = vcmask 57344   ;;  %v458_v25 = vand.u32 127, %v94_v22 }
  0x17   :  { %599 = vmatpush1.bf16.msra.mxu0 %v598_v12  ;;  %54 = vst.msk [vmem:[#allocation2] sm:$0x1] %vm53_vm0, %v52_v13  ;;  %v57_v14 = vld [vmem:[%s56_s3] sm:$0x1]  ;;  %s68_s30 = scalar_lea.vmem %s895_s2, %s522_s17  ;;  %s72_s0 = scalar_lea.vmem %s895_s2, %s523_s18  ;;  %602 = vmatpush3.bf16.msra.mxu1 %v601_v47  ;;  %v616_v58 = vpack.c.bf16 %v200_v56, %v199_v55  ;;  %v369_v2 = vld [vmem:[%s901_s8 + $0x10] sm:$0xff]  ;;  %v370_v4 = vld [vmem:[%s901_s8 + $0x18] sm:$0xff] }
  0x18   :  { %58 = vst.msk [vmem:[#allocation2 + $0x1] sm:$0x1] %vm53_vm0, %v57_v14  ;;  %v61_v15 = vld [vmem:[%s60_s28] sm:$0x1]  ;;  %s76_s22 = scalar_lea.vmem %s895_s2, %s524_s19  ;;  %s80_s3 = scalar_lea.vmem %s895_s2, %s525_s20  ;;  %606 = vmatprep.subr.bf16.mxu0 %v686_v42  ;;  %603 = vmatprep.subr.bf16.mxu1 %v686_v42  ;;  %v622_v5 = vpack.c.bf16 %v370_v4, %v369_v2  ;;  %vm488_vm8 = vcmp.eq.s32.totalorder %v458_v25, 0  ;;  %vm490_vm9 = vcmp.eq.s32.totalorder %v458_v25, 1 }
  0x19   :  { %v65_v16 = vld [vmem:[%s64_s12] sm:$0x1]  ;;  %62 = vst.msk [vmem:[#allocation2 + $0x2] sm:$0x1] %vm53_vm0, %v61_v15  ;;  %s688_s2 = smov 64   ;;  %vm493_vm10 = vcmp.eq.s32.totalorder %v458_v25, 2 }
  0x1a   :  { %66 = vst.msk [vmem:[#allocation2 + $0x3] sm:$0x1] %vm53_vm0, %v65_v16  ;;  %v69_v17 = vld [vmem:[%s68_s30] sm:$0x1] }
  0x1b   :  { %v73_v18 = vld [vmem:[%s72_s0] sm:$0x1]  ;;  %70 = vst.msk [vmem:[#allocation2 + $0x4] sm:$0x1] %vm53_vm0, %v69_v17  ;;  %605 = vmatpush3.bf16.msra.mxu1 %v604_v53 }
  0x1c   :  { %74 = vst.msk [vmem:[#allocation2 + $0x5] sm:$0x1] %vm53_vm0, %v73_v18  ;;  %v77_v19 = vld [vmem:[%s76_s22] sm:$0x1]  ;;  %618 = vmatprep.subr.bf16.mxu1 %v686_v42 }
  0x1d   :  { %v81_v20 = vld [vmem:[%s80_s3] sm:$0x1]  ;;  %78 = vst.msk [vmem:[#allocation2 + $0x6] sm:$0x1] %vm53_vm0, %v77_v19 }
  0x1e   :  { %82 = vst.msk [vmem:[#allocation2 + $0x7] sm:$0x1] %vm53_vm0, %v81_v20  ;;  %v367_v0 = vld [vmem:[%s901_s8] sm:$0xff] }
  0x1f   :  { %v619_v3 = vpack.c.bf16 %v368_v1, %v367_v0  ;;  %v371_v19 = vld [vmem:[%s902_s9] sm:$0x1] }
  0x25   :  { %v83_v21 = vld [vmem:[#allocation2] sm:$0xff] }
  0x26   :  { %526 = vmatmul.mubr.msk.f32.vlgmr.msra.gmra.mrb[0].mxu0 %vm104_vm1, %v83_v21  ;;  %560 = vmatmul.mubr.msk.f32.vlgmr.msra.gmra.mrb[0].mxu1 %vm104_vm1, %v83_v21 }
  0x27   :  { %578 = vmatprep.mubr.msk.f32.mxu0 %vm687_vm2, %v685_v7  ;;  %608 = vmatpush3.bf16.msra.mxu0 %v607_v43 }
  0x28   :  { %609 = vmatprep.subr.bf16.mxu0 %v686_v42  ;;  %589 = vmatprep.mubr.msk.f32.mxu1 %vm687_vm2, %v685_v7  ;;  %v530_v7 = vld [vmem:[%s900_s7] ss:$0 sm:$0xff] }
  0x29   :  { %620 = vmatpush3.bf16.msra.mxu1 %v619_v3 }
  0x2a   :  { %621 = vmatprep.subr.bf16.mxu1 %v686_v42 }
  0x2b   :  { %611 = vmatpush3.bf16.msra.mxu0 %v610_v49 }
  0x2c   :  { %612 = vmatprep.subr.bf16.mxu0 %v686_v42 }
  0x2d   :  { %623 = vmatpush3.bf16.msra.mxu1 %v622_v5 }
  0x2f   :  { %614 = vmatpush3.bf16.msra.mxu0 %v613_v54 }
  0x30   :  { %615 = vmatprep.subr.bf16.mxu0 %v686_v42 }
  0x33   :  { %617 = vmatpush3.bf16.msra.mxu0 %v616_v58 }
  0xf9   :  { %v174_v27 = vpop.f32.mrb[0].mxu0  ;;  %v271_v61 = vpop.f32.mrb[0].mxu1 }
  0xfa   :  { %v175_v28 = vadd.f32 %v174_v27, %v97_v26  ;;  %v176_v29 = vpop.f32.mrb[1].mxu0  ;;  %v561_v62 = vpop.f32.mrb[1].mxu1 }
  0xfb   :  { %v177_v33 = vadd.f32 %v176_v29, %v101_v32  ;;  %v460_v29 = vstv %s894_s1  ;;  %s689_s1 = smov [#allocation7]  }
  0xfc   :  { %v527_v30 = vmul.f32 -1.442695, %v175_v28  ;;  %vm461_vm6 = vcmp.eq.s32.totalorder %v458_v25, %v460_v29  ;;  %s502_s9 = sshll.u32 %s689_s1, 4  ;;  %s503_s9 = int_to_ptr.vmem [resolvable:$true] %s502_s9 }
  0xfd   :  { %s658_s13 = scalar_lea.vmem %s503_s9, 16  ;;  %s662_s30 = scalar_lea.vmem %s503_s9, 32 }
  0xfe   :  { %630 = vpow2.f32 %v527_v30  ;;  %p659_p5 = scmp.ne.s32.totalorder %s503_s9, %s658_s13  ;;  %p663_p6 = scmp.lt.s32.totalorder %s503_s9, %s503_s9 }
  0xff   :  { %632 = vtanh.f32 %v177_v33  ;;  %p664_p7 = scmp.lt.s32.totalorder %s662_s30, %s658_s13 }
 0x101   :  { %p665_p8 = por %p664_p7, %p663_p6 }
 0x103   :  { %p666_p9 = pnand %p665_p8, %p659_p5 }
 0x108   :  { %v631_v34 = vpop.eup %630 }
 0x109   :  { %v182_v35 = vadd.f32 1.0, %v631_v34  ;;  %v633_v36 = vpop.eup %632 }
 0x10b   :  { %634 = vrcp.f32 %v182_v35 }
 0x115   :  { %v635_v37 = vpop.eup %634 }
 0x116   :  { %v186_v38 = vmul.f32 %v635_v37, %v633_v36 }
 0x118   :  { %636 = vtanh.f32 %v186_v38 }
 0x122   :  { %v637_v57 = vpop.eup %636 }
 0x123   :  { %189 = vrot.lane.b32.xlu0 %v637_v57, %s688_s2 }
 0x195   :  { %v190_v59 = vpop.permute.xlu0 %189 }
 0x196   :  { %v192_v60 = vmul.f32 %v635_v37, %v190_v59 }
 0x198   :  { %276 = vrot.lane.b32.xlu0 %v192_v60, %s688_s2 }
 0x20a   :  { %v277_v63 = vpop.permute.xlu0 %276 }
 0x20b   :  { %579 = vmatmul.mubr.msk.f32.vlgmr.msra.gmra.mrb[2].mxu0 %vm278_vm3, %v277_v63 }
 0x2de   :  { %v347_v6 = vpop.f32.mrb[2].mxu0 }
 0x2df   :  { %v348_v8 = vadd.f32 %v347_v6, %v271_v61  ;;  %v580_v9 = vpop.f32.mrb[3].mxu0 }
 0x2e1   :  { %v358_v10 = vadd.f32 %v530_v7, %v348_v8 }
 0x2e3   :  { %638 = vtanh.f32 %v358_v10 }
 0x2ed   :  { %v639_v11 = vpop.eup %638 }
 0x2ee   :  { %v360_v12 = vsel %vm104_vm1, %v639_v11, -inf }
 0x2ef   :  { %v361_v13 = vrot.slane %v360_v12, 4 }
 0x2f1   :  { %v362_v14 = vmax.f32 %v360_v12, %v361_v13 }
 0x2f3   :  { %v363_v15 = vrot.slane %v362_v14, 2 }
 0x2f5   :  { %v364_v16 = vmax.f32 %v362_v14, %v363_v15 }
 0x2f7   :  { %v365_v17 = vrot.slane %v364_v16, 1 }
 0x2f9   :  { %v366_v18 = vmax.f32 %v364_v16, %v365_v17 }
 0x2fb   :  { %590 = vmatmul.mubr.msk.f32.vlgmr.msra.gmra.mrb[2].mxu1 %vm104_vm1, %v366_v18 }
 0x3ce   :  { %v441_v20 = vpop.f32.mrb[2].mxu1 }
 0x3cf   :  { %v442_v21 = vadd.f32 %v441_v20, %v371_v19  ;;  %v591_v23 = vpop.f32.mrb[3].mxu1 }
 0x3d1   :  { %v446_v24 = vsel %vm445_vm4, %v442_v21, -inf  ;;  %v462_v34 = vsel %vm461_vm6, %v442_v21, 0.0 }
 0x3d2   :  { %447 = vmax.xlane.f32.xlu1 %v446_v24  ;;  %v463_v35 = vsel %vm445_vm4, %v462_v34, 0.0 }
 0x45f   :  { %v448_v26 = vpop.xlane.xlu1 %447 }
 0x460   :  { %v449_v27 = vsub.f32 %v442_v21, %v448_v26  ;;  %vm469_vm5 = vcmp.eq.f32.partialorder %v442_v21, %v448_v26 }
 0x461   :  { %v470_v28 = vsel %vm469_vm5, %v458_v25, 8 }
 0x462   :  { %v450_v30 = vmul.f32 1.442695, %v449_v27  ;;  %v471_v31 = vsel %vm445_vm4, %v470_v28, 2147483647 }
 0x463   :  { %v473_v32 = vshra.s32 %v471_v31, 16  ;;  %v472_v37 = vand.u32 65535, %v471_v31 }
 0x464   :  { %640 = vpow2.f32 %v450_v30 }
 0x465   :  { %v475_v33 = vcvt.s32.f32 %v473_v32  ;;  %v474_v39 = vcvt.s32.f32 %v472_v37 }
 0x467   :  { %476 = vmin.xlane.f32.xlu1 %v475_v33 }
 0x46b   :  { %464 = vadd.xlane.f32.xlu1 %v463_v35 }
 0x46e   :  { %v641_v22 = vpop.eup %640 }
 0x46f   :  { %v452_v36 = vsel %vm445_vm4, %v641_v22, 0.0 }
 0x470   :  { %453 = vadd.xlane.f32.xlu0 %v452_v36 }
 0x4f4   :  { %v477_v38 = vpop.xlane.xlu1 %476 }
 0x4f5   :  { %vm478_vm7 = vcmp.eq.f32.partialorder %v475_v33, %v477_v38  ;;  %v483_v46 = vcvt.f32.s32 %v477_v38 }
 0x4f6   :  { %v479_v40 = vsel %vm478_vm7, %v474_v39, inf }
 0x4f7   :  { %480 = vmin.xlane.f32.xlu1 %v479_v40  ;;  %v484_v49 = vshll.u32 %v483_v46, 16 }
 0x4f8   :  { %v465_v43 = vpop.xlane.xlu1 %464 }
 0x4f9   :  { %v466_v45 = vsub.f32 %v465_v43, %v448_v26 }
 0x4fd   :  { %v454_v41 = vpop.xlane.xlu0 %453 }
 0x4fe   :  { %642 = vlog2.f32 %v454_v41 }
 0x4ff   :  { %644 = vrcp.f32 %v454_v41 }
 0x508   :  { %v643_v42 = vpop.eup %642 }
 0x509   :  { %v456_v44 = vmul.f32 0.6931472, %v643_v42  ;;  %v645_v55 = vpop.eup %644 }
 0x50b   :  { %v467_v47 = vsub.f32 %v466_v45, %v456_v44 }
 0x50d   :  { %v468_v51 = vsub.f32 0.0, %v467_v47 }
 0x50f   :  { %v489_v54 = vsel %vm488_vm8, %v468_v51, 0.0 }
 0x584   :  { %v481_v48 = vpop.xlane.xlu1 %480 }
 0x585   :  { %v482_v50 = vcvt.f32.s32 %v481_v48 }
 0x587   :  { %v485_v52 = vadd.s32 %v484_v49, %v482_v50 }
 0x589   :  { %v491_v53 = vcvt.s32.f32 %v485_v52 }
 0x58b   :  { %v492_v56 = vsel %vm490_vm9, %v491_v53, %v489_v54 }
 0x58c   :  { %v494_v57 = vsel %vm493_vm10, %v645_v55, %v492_v56 }
 0x58d   :  { %495 = vst [vmem:[#allocation7] sm:$0x1] %v494_v57 }
 0x58e   :  { %669 = shalt.err (!%p666_p9)
}
 0x58f   :  { %s670_s0 = scalar_lea.hbm %s903_s10, 16 }
 0x590   :  { %p671_p10 = scmp.ne.s32.totalorder %s903_s10, %s670_s0  ;;  %p674_p11 = scmp.lt.u32.totalorder %s670_s0, %s903_s10 }
 0x592   :  { %p676_p12 = pnand %p674_p11, %p671_p10 }
 0x594   :  { %679 = shalt.err (!%p676_p12)
}
 0x595   :  { %505 = dma.vmem_to_hbm [thread:$0]  %s503_s9, 16, %s903_s10, [#allocation5]  }
 0x596   :  { %682 = dma.done.wait [#allocation5], 16  }
 0x597   :  { %683 = vsyncadd [#allocation5], 4294967280 }
 0x598   :  { %509 = vsyncpa [#allocation5], 1 }
 0x599   :  { %510 = vsyncpa [#allocation6], 1 }

</bundles_post_ra>
